<compile_context>
chip_gen: v7x
topology: tpu7x:2x2x1
jax: 0.10.0
libtpu: 0.0.40
codegen_flags: <defaults>
</compile_context>

<pallas_src>
import jax
import jax.numpy as jnp
from jax.experimental import pallas as pl
from jax.experimental.pallas import tpu as pltpu

# ----------------------------- configuration --------------------------------
B = 2          # batch
T = 16         # input sequence length (even)
C = 8          # in_planes (channels)
HIDDEN = 2     # hidden_size  -> hidden channels = C * HIDDEN
H = C * HIDDEN
K1 = 5         # first conv kernel size (odd)
K2 = 3         # second conv kernel size (fixed in the module)

L = T // 2                                  # length of even/odd halves
PAD_L = (K1 - 1) // 2 + 1                   # replication pad (odd kernel)
PAD_R = (K1 - 1) // 2 + 1
L_PAD = L + PAD_L + PAD_R                   # length after replication pad
L1 = L_PAD - K1 + 1                         # length after first conv (= L + 2)
assert L1 - K2 + 1 == L                     # second conv restores length L

# branch order inside the stacked weights
PHI, PSI, U, P = 0, 1, 2, 3


# ------------------------------- kernel --------------------------------------
def _levelscinet_kernel(a_ref, x_ref, w1a_ref, b1a_ref, w2a_ref, b2a_ref,
                        w1b_ref, b1b_ref, w2b_ref, b2b_ref, out_ref):
    """One batch element per grid step.

    a_ref  : (L1, K1*2C)  stage-A im2col of rep-padded [even | odd] (wrapper-built)
    x_ref  : (L, 2C)      [x_even | x_odd] lanes
    w1*    : (K1*2C, 2H)  tap-interleaved block-diagonal fused first-conv weights
    b1*    : (1, 2H)
    w2*    : (K2*2H, 2C)  block-diagonal fused second-conv weights
    b2*    : (1, 2C)
    out_ref: (L, 2C)      [even update | odd update] lanes
    """
    # ---- stage A: fused phi(x_even) | psi(x_odd); im2col came from the wrapper
    h = jnp.dot(a_ref[...], w1a_ref[...],
                preferred_element_type=jnp.float32) + b1a_ref[...]      # (L1, 2H)
    h = jnp.where(h > 0, h, 0.01 * h)                                   # LeakyReLU(0.01)
    # TODO(synk): Dropout(p=0.5) is identity here (inference mode).
    hcols = jnp.concatenate([h[t:t + L, :] for t in range(K2)], axis=-1)  # (L, K2*2H)
    y = jnp.tanh(jnp.dot(hcols, w2a_ref[...],
                         preferred_element_type=jnp.float32) + b2a_ref[...])  # (L, 2C)

    x = x_ref[...]
    ex = jnp.exp(y)
    d = x[:, C:] * ex[:, :C]          # d = x_odd  * exp(phi(x_even))
    c = x[:, :C] * ex[:, C:]          # c = x_even * exp(psi(x_odd))

    # ---- stage B: fused U(d) | P(c); rep-pad + im2col built in-register
    dc = jnp.concatenate([d, c], axis=-1)                               # (L, 2C)
    dcp = jnp.concatenate([
        jnp.broadcast_to(dc[0:1, :], (PAD_L, 2 * C)),
        dc,
        jnp.broadcast_to(dc[L - 1:L, :], (PAD_R, 2 * C))], axis=0)      # (L_PAD, 2C)
    # tap-interleaved im2col: one shifted slice per tap (matches fused weight rows)
    b_in = jnp.concatenate([dcp[t:t + L1, :] for t in range(K1)], axis=-1)  # (L1, K1*2C)

    h2 = jnp.dot(b_in, w1b_ref[...],
                 preferred_element_type=jnp.float32) + b1b_ref[...]     # (L1, 2H)
    h2 = jnp.where(h2 > 0, h2, 0.01 * h2)
    h2cols = jnp.concatenate([h2[t:t + L, :] for t in range(K2)], axis=-1)  # (L, K2*2H)
    y2 = jnp.tanh(jnp.dot(h2cols, w2b_ref[...],
                          preferred_element_type=jnp.float32) + b2b_ref[...])  # (L, 2C)

    # direct half-stores (no result concat before the store)
    out_ref[:, :C] = c + y2[:, :C]    # even update: c + U(d)
    out_ref[:, C:] = d - y2[:, C:]    # odd  update: d - P(c)


# ------------------------------ wrapper ---------------------------------------
def _fuse_stage_weights(w1_a, b1_a, w2_a, b2_a, w1_b, b1_b, w2_b, b2_b):
    """Block-diagonal fused weights for one branch pair (a, b), tap-interleaved rows.

    First-conv fused weight row index = t*2C + c with c in [0, C) -> branch a,
    c in [C, 2C) -> branch b, matching an im2col built as
    concat([slab[t:t+L1, :] for t in range(K1)], axis=-1) over a [a | b] slab.
    """
    # first conv: w1_* is (K1, C, H)
    top1 = jnp.concatenate([w1_a, jnp.zeros_like(w1_a)], axis=-1)        # (K1, C, 2H)
    bot1 = jnp.concatenate([jnp.zeros_like(w1_b), w1_b], axis=-1)        # (K1, C, 2H)
    w1f = jnp.concatenate([top1, bot1], axis=1).reshape(K1 * 2 * C, 2 * H)
    bias1 = jnp.concatenate([b1_a, b1_b])[None, :]                       # (1, 2H)
    # second conv: w2_* is (K2, H, C); fused hidden lanes are [a_H | b_H]
    top2 = jnp.concatenate([w2_a, jnp.zeros_like(w2_a)], axis=-1)        # (K2, H, 2C)
    bot2 = jnp.concatenate([jnp.zeros_like(w2_b), w2_b], axis=-1)        # (K2, H, 2C)
    w2f = jnp.concatenate([top2, bot2], axis=1).reshape(K2 * 2 * H, 2 * C)
    bias2 = jnp.concatenate([b2_a, b2_b])[None, :]                       # (1, 2C)
    return w1f, bias1, w2f, bias2


@jax.jit
def levelscinet_pallas(x, w1, b1, w2, b2):
    """x: (B, T, C) float32 -> (even_out, odd_out), each (B, T//2, C)."""
    # Free contiguous reshape does the even/odd de-interleave:
    # lanes [0:C) = x[:, ::2, :], lanes [C:2C) = x[:, 1::2, :].
    x2 = x.reshape(B, L, 2 * C)

    # Stage-A replication pad + im2col is pure layout on x -> hoisted here.
    x2p = jnp.pad(x2, ((0, 0), (PAD_L, PAD_R), (0, 0)), mode="edge")     # (B, L_PAD, 2C)
    a_in = jnp.concatenate([x2p[:, t:t + L1, :] for t in range(K1)],
                           axis=-1)                                      # (B, L1, K1*2C)

    w1a, b1a, w2a, b2a = _fuse_stage_weights(w1[PHI], b1[PHI], w2[PHI], b2[PHI],
                                             w1[PSI], b1[PSI], w2[PSI], b2[PSI])
    w1b, b1b, w2b, b2b = _fuse_stage_weights(w1[U], b1[U], w2[U], b2[U],
                                             w1[P], b1[P], w2[P], b2[P])

    grid_spec = pltpu.PrefetchScalarGridSpec(
        num_scalar_prefetch=0,
        grid=(B,),                                    # batch axis: megacore on v7x
        in_specs=[
            pl.BlockSpec((None, L1, K1 * 2 * C), lambda b: (b, 0, 0)),   # stage-A im2col
            pl.BlockSpec((None, L, 2 * C), lambda b: (b, 0, 0)),         # x (even|odd)
            pl.BlockSpec((K1 * 2 * C, 2 * H), lambda b: (0, 0)),         # w1 (phi|psi)
            pl.BlockSpec((1, 2 * H), lambda b: (0, 0)),                  # b1 (phi|psi)
            pl.BlockSpec((K2 * 2 * H, 2 * C), lambda b: (0, 0)),         # w2 (phi|psi)
            pl.BlockSpec((1, 2 * C), lambda b: (0, 0)),                  # b2 (phi|psi)
            pl.BlockSpec((K1 * 2 * C, 2 * H), lambda b: (0, 0)),         # w1 (U|P)
            pl.BlockSpec((1, 2 * H), lambda b: (0, 0)),                  # b1 (U|P)
            pl.BlockSpec((K2 * 2 * H, 2 * C), lambda b: (0, 0)),         # w2 (U|P)
            pl.BlockSpec((1, 2 * C), lambda b: (0, 0)),                  # b2 (U|P)
        ],
        out_specs=pl.BlockSpec((None, L, 2 * C), lambda b: (b, 0, 0)),
    )

    out = pl.pallas_call(
        _levelscinet_kernel,
        out_shape=jax.ShapeDtypeStruct((B, L, 2 * C), jnp.float32),
        grid_spec=grid_spec,
        compiler_params=pltpu.CompilerParams(
            dimension_semantics=("parallel",)),
    )(a_in, x2, w1a, b1a, w2a, b2a, w1b, b1b, w2b, b2b)

    return out[:, :, :C], out[:, :, C:]


# ----------------------- pure-JAX reference (for checking) -------------------
def _branch_ref(x, w1, b1, w2, b2):
    # x: (B, L, C);  w1: (K1, C, H);  w2: (K2, H, C)
    xp = jnp.pad(x, ((0, 0), (PAD_L, PAD_R), (0, 0)), mode="edge")
    h = jnp.zeros((x.shape[0], L1, H), jnp.float32) + b1[None, None, :]
    for k in range(K1):
        h = h + jnp.einsum("blc,ch->blh", xp[:, k:k + L1, :], w1[k])
    h = jnp.where(h > 0, h, 0.01 * h)
    y = jnp.zeros((x.shape[0], L, C), jnp.float32) + b2[None, None, :]
    for k in range(K2):
        y = y + jnp.einsum("blh,hc->blc", h[:, k:k + L, :], w2[k])
    return jnp.tanh(y)


def levelscinet_ref(x, w1, b1, w2, b2):
    xe = x[:, ::2, :]
    xo = x[:, 1::2, :]
    d = xo * jnp.exp(_branch_ref(xe, w1[PHI], b1[PHI], w2[PHI], b2[PHI]))
    c = xe * jnp.exp(_branch_ref(xo, w1[PSI], b1[PSI], w2[PSI], b2[PSI]))
    even_out = c + _branch_ref(d, w1[U], b1[U], w2[U], b2[U])
    odd_out = d - _branch_ref(c, w1[P], b1[P], w2[P], b2[P])
    return even_out, odd_out


# --------------------------------- main ---------------------------------------
if __name__ == "__main__":
    key = jax.random.PRNGKey(0)
    kx, kw1, kb1, kw2, kb2 = jax.random.split(key, 5)

    x = jax.random.normal(kx, (B, T, C), dtype=jnp.float32)

    # Deterministic synthetic parameters (4 branches: phi, psi, U, P), already
    # in channel-last matmul layout:
    #   w1[branch, k, c_in, c_hidden],  w2[branch, k, c_hidden, c_out]
    w1 = 0.1 * jax.random.normal(kw1, (4, K1, C, H), dtype=jnp.float32)
    b1 = 0.1 * jax.random.normal(kb1, (4, H), dtype=jnp.float32)
    w2 = 0.1 * jax.random.normal(kw2, (4, K2, H, C), dtype=jnp.float32)
    b2 = 0.1 * jax.random.normal(kb2, (4, C), dtype=jnp.float32)

    even_out, odd_out = levelscinet_pallas(x, w1, b1, w2, b2)
    jax.block_until_ready((even_out, odd_out))

    even_ref, odd_ref = levelscinet_ref(x, w1, b1, w2, b2)
    assert even_out.shape == (B, T // 2, C) and odd_out.shape == (B, T // 2, C)
    assert jnp.allclose(even_out, even_ref, atol=1e-4, rtol=1e-4)
    assert jnp.allclose(odd_out, odd_ref, atol=1e-4, rtol=1e-4)

    print("KERNEL_OK")
</pallas_src>

<mosaic_0001>
module attributes {stable_mosaic.version = 11 : i64} {
  func.func @_levelscinet_kernel(%arg0: i32, %arg1: memref<1x10x80xf32, #tpu.memory_space<vmem>>, %arg2: memref<1x8x16xf32, #tpu.memory_space<vmem>>, %arg3: memref<80x32xf32, #tpu.memory_space<vmem>>, %arg4: memref<1x32xf32, #tpu.memory_space<vmem>>, %arg5: memref<96x16xf32, #tpu.memory_space<vmem>>, %arg6: memref<1x16xf32, #tpu.memory_space<vmem>>, %arg7: memref<80x32xf32, #tpu.memory_space<vmem>>, %arg8: memref<1x32xf32, #tpu.memory_space<vmem>>, %arg9: memref<96x16xf32, #tpu.memory_space<vmem>>, %arg10: memref<1x16xf32, #tpu.memory_space<vmem>>, %arg11: memref<1x8x16xf32, #tpu.memory_space<vmem>>) attributes {dimension_semantics = [#tpu.dimension_semantics<parallel>], iteration_bounds = array<i64: 2>, scalar_prefetch = 0 : i64, scratch_operands = 0 : i64, tpu.core_type = #tpu.core_type<tc>, window_params = [{transform_indices = @transform_0, window_bounds = array<i64: 1, 10, 80>}, {transform_indices = @transform_1, window_bounds = array<i64: 1, 8, 16>}, {pipeline_mode = #tpu.pipeline_mode<synchronous>, transform_indices = @transform_2, window_bounds = array<i64: 80, 32>}, {pipeline_mode = #tpu.pipeline_mode<synchronous>, transform_indices = @transform_3, window_bounds = array<i64: 1, 32>}, {pipeline_mode = #tpu.pipeline_mode<synchronous>, transform_indices = @transform_4, window_bounds = array<i64: 96, 16>}, {pipeline_mode = #tpu.pipeline_mode<synchronous>, transform_indices = @transform_5, window_bounds = array<i64: 1, 16>}, {pipeline_mode = #tpu.pipeline_mode<synchronous>, transform_indices = @transform_6, window_bounds = array<i64: 80, 32>}, {pipeline_mode = #tpu.pipeline_mode<synchronous>, transform_indices = @transform_7, window_bounds = array<i64: 1, 32>}, {pipeline_mode = #tpu.pipeline_mode<synchronous>, transform_indices = @transform_8, window_bounds = array<i64: 96, 16>}, {pipeline_mode = #tpu.pipeline_mode<synchronous>, transform_indices = @transform_9, window_bounds = array<i64: 1, 16>}, {transform_indices = @transform_10, window_bounds = array<i64: 1, 8, 16>}]} {
    %c0 = arith.constant 0 : index
    %c0_0 = arith.constant 0 : index
    %c0_1 = arith.constant 0 : index
    %0 = vector.load %arg1[%c0, %c0_0, %c0_1] : memref<1x10x80xf32, #tpu.memory_space<vmem>>, vector<1x10x80xf32>
    %1 = vector.shape_cast %0 : vector<1x10x80xf32> to vector<10x80xf32>
    %c0_2 = arith.constant 0 : index
    %c0_3 = arith.constant 0 : index
    %2 = vector.load %arg3[%c0_2, %c0_3] : memref<80x32xf32, #tpu.memory_space<vmem>>, vector<80x32xf32>
    %cst = arith.constant dense<0.000000e+00> : vector<10x32xf32>
    %3 = tpu.matmul %1, %2, %cst {dimension_numbers = #tpu.dot_dimension_numbers<[1], [0], [0], [1], [0, 0, 1, 1], [], []>} : vector<10x80xf32>, vector<80x32xf32>, vector<10x32xf32> -> vector<10x32xf32>
    %c0_4 = arith.constant 0 : index
    %c0_5 = arith.constant 0 : index
    %4 = vector.load %arg4[%c0_4, %c0_5] : memref<1x32xf32, #tpu.memory_space<vmem>>, vector<1x32xf32>
    %5 = vector.broadcast %4 : vector<1x32xf32> to vector<10x32xf32>
    %6 = arith.addf %3, %5 : vector<10x32xf32>
    %cst_6 = arith.constant 0.000000e+00 : f32
    %7 = vector.broadcast %cst_6 : f32 to vector<10x32xf32>
    %8 = arith.cmpf ogt, %6, %7 : vector<10x32xf32>
    %cst_7 = arith.constant 0.00999999977 : f32
    %9 = vector.broadcast %cst_7 : f32 to vector<10x32xf32>
    %10 = arith.mulf %9, %6 : vector<10x32xf32>
    %11 = arith.select %8, %6, %10 : vector<10x32xi1>, vector<10x32xf32>
    %12 = vector.extract_strided_slice %11 {offsets = [0, 0], sizes = [8, 32], strides = [1, 1]} : vector<10x32xf32> to vector<8x32xf32>
    %13 = vector.extract_strided_slice %11 {offsets = [1, 0], sizes = [8, 32], strides = [1, 1]} : vector<10x32xf32> to vector<8x32xf32>
    %14 = vector.extract_strided_slice %11 {offsets = [2, 0], sizes = [8, 32], strides = [1, 1]} : vector<10x32xf32> to vector<8x32xf32>
    %15 = tpu.concatenate %12, %13, %14 in 1 : vector<8x32xf32>, vector<8x32xf32>, vector<8x32xf32> -> vector<8x96xf32>
    %c0_8 = arith.constant 0 : index
    %c0_9 = arith.constant 0 : index
    %16 = vector.load %arg5[%c0_8, %c0_9] : memref<96x16xf32, #tpu.memory_space<vmem>>, vector<96x16xf32>
    %cst_10 = arith.constant dense<0.000000e+00> : vector<8x16xf32>
    %17 = tpu.matmul %15, %16, %cst_10 {dimension_numbers = #tpu.dot_dimension_numbers<[1], [0], [0], [1], [0, 0, 1, 1], [], []>} : vector<8x96xf32>, vector<96x16xf32>, vector<8x16xf32> -> vector<8x16xf32>
    %c0_11 = arith.constant 0 : index
    %c0_12 = arith.constant 0 : index
    %18 = vector.load %arg6[%c0_11, %c0_12] : memref<1x16xf32, #tpu.memory_space<vmem>>, vector<1x16xf32>
    %19 = vector.broadcast %18 : vector<1x16xf32> to vector<8x16xf32>
    %20 = arith.addf %17, %19 : vector<8x16xf32>
    %21 = math.tanh %20 : vector<8x16xf32>
    %c0_13 = arith.constant 0 : index
    %c0_14 = arith.constant 0 : index
    %c0_15 = arith.constant 0 : index
    %22 = vector.load %arg2[%c0_13, %c0_14, %c0_15] : memref<1x8x16xf32, #tpu.memory_space<vmem>>, vector<1x8x16xf32>
    %23 = vector.shape_cast %22 : vector<1x8x16xf32> to vector<8x16xf32>
    %24 = math.exp %21 : vector<8x16xf32>
    %25 = vector.extract_strided_slice %23 {offsets = [0, 8], sizes = [8, 8], strides = [1, 1]} : vector<8x16xf32> to vector<8x8xf32>
    %26 = vector.extract_strided_slice %24 {offsets = [0, 0], sizes = [8, 8], strides = [1, 1]} : vector<8x16xf32> to vector<8x8xf32>
    %27 = arith.mulf %25, %26 : vector<8x8xf32>
    %28 = vector.extract_strided_slice %23 {offsets = [0, 0], sizes = [8, 8], strides = [1, 1]} : vector<8x16xf32> to vector<8x8xf32>
    %29 = vector.extract_strided_slice %24 {offsets = [0, 8], sizes = [8, 8], strides = [1, 1]} : vector<8x16xf32> to vector<8x8xf32>
    %30 = arith.mulf %28, %29 : vector<8x8xf32>
    %31 = tpu.concatenate %27, %30 in 1 : vector<8x8xf32>, vector<8x8xf32> -> vector<8x16xf32>
    %32 = vector.extract_strided_slice %31 {offsets = [0, 0], sizes = [1, 16], strides = [1, 1]} : vector<8x16xf32> to vector<1x16xf32>
    %33 = vector.shape_cast %32 : vector<1x16xf32> to vector<1x16xf32>
    %34 = vector.broadcast %33 : vector<1x16xf32> to vector<3x16xf32>
    %35 = vector.extract_strided_slice %31 {offsets = [7, 0], sizes = [1, 16], strides = [1, 1]} : vector<8x16xf32> to vector<1x16xf32>
    %36 = vector.shape_cast %35 : vector<1x16xf32> to vector<1x16xf32>
    %37 = vector.broadcast %36 : vector<1x16xf32> to vector<3x16xf32>
    %38 = tpu.concatenate %34, %31, %37 in 0 : vector<3x16xf32>, vector<8x16xf32>, vector<3x16xf32> -> vector<14x16xf32>
    %39 = vector.extract_strided_slice %38 {offsets = [0, 0], sizes = [10, 16], strides = [1, 1]} : vector<14x16xf32> to vector<10x16xf32>
    %40 = vector.extract_strided_slice %38 {offsets = [1, 0], sizes = [10, 16], strides = [1, 1]} : vector<14x16xf32> to vector<10x16xf32>
    %41 = vector.extract_strided_slice %38 {offsets = [2, 0], sizes = [10, 16], strides = [1, 1]} : vector<14x16xf32> to vector<10x16xf32>
    %42 = vector.extract_strided_slice %38 {offsets = [3, 0], sizes = [10, 16], strides = [1, 1]} : vector<14x16xf32> to vector<10x16xf32>
    %43 = vector.extract_strided_slice %38 {offsets = [4, 0], sizes = [10, 16], strides = [1, 1]} : vector<14x16xf32> to vector<10x16xf32>
    %44 = tpu.concatenate %39, %40, %41, %42, %43 in 1 : vector<10x16xf32>, vector<10x16xf32>, vector<10x16xf32>, vector<10x16xf32>, vector<10x16xf32> -> vector<10x80xf32>
    %c0_16 = arith.constant 0 : index
    %c0_17 = arith.constant 0 : index
    %45 = vector.load %arg7[%c0_16, %c0_17] : memref<80x32xf32, #tpu.memory_space<vmem>>, vector<80x32xf32>
    %cst_18 = arith.constant dense<0.000000e+00> : vector<10x32xf32>
    %46 = tpu.matmul %44, %45, %cst_18 {dimension_numbers = #tpu.dot_dimension_numbers<[1], [0], [0], [1], [0, 0, 1, 1], [], []>} : vector<10x80xf32>, vector<80x32xf32>, vector<10x32xf32> -> vector<10x32xf32>
    %c0_19 = arith.constant 0 : index
    %c0_20 = arith.constant 0 : index
    %47 = vector.load %arg8[%c0_19, %c0_20] : memref<1x32xf32, #tpu.memory_space<vmem>>, vector<1x32xf32>
    %48 = vector.broadcast %47 : vector<1x32xf32> to vector<10x32xf32>
    %49 = arith.addf %46, %48 : vector<10x32xf32>
    %cst_21 = arith.constant 0.000000e+00 : f32
    %50 = vector.broadcast %cst_21 : f32 to vector<10x32xf32>
    %51 = arith.cmpf ogt, %49, %50 : vector<10x32xf32>
    %cst_22 = arith.constant 0.00999999977 : f32
    %52 = vector.broadcast %cst_22 : f32 to vector<10x32xf32>
    %53 = arith.mulf %52, %49 : vector<10x32xf32>
    %54 = arith.select %51, %49, %53 : vector<10x32xi1>, vector<10x32xf32>
    %55 = vector.extract_strided_slice %54 {offsets = [0, 0], sizes = [8, 32], strides = [1, 1]} : vector<10x32xf32> to vector<8x32xf32>
    %56 = vector.extract_strided_slice %54 {offsets = [1, 0], sizes = [8, 32], strides = [1, 1]} : vector<10x32xf32> to vector<8x32xf32>
    %57 = vector.extract_strided_slice %54 {offsets = [2, 0], sizes = [8, 32], strides = [1, 1]} : vector<10x32xf32> to vector<8x32xf32>
    %58 = tpu.concatenate %55, %56, %57 in 1 : vector<8x32xf32>, vector<8x32xf32>, vector<8x32xf32> -> vector<8x96xf32>
    %c0_23 = arith.constant 0 : index
    %c0_24 = arith.constant 0 : index
    %59 = vector.load %arg9[%c0_23, %c0_24] : memref<96x16xf32, #tpu.memory_space<vmem>>, vector<96x16xf32>
    %cst_25 = arith.constant dense<0.000000e+00> : vector<8x16xf32>
    %60 = tpu.matmul %58, %59, %cst_25 {dimension_numbers = #tpu.dot_dimension_numbers<[1], [0], [0], [1], [0, 0, 1, 1], [], []>} : vector<8x96xf32>, vector<96x16xf32>, vector<8x16xf32> -> vector<8x16xf32>
    %c0_26 = arith.constant 0 : index
    %c0_27 = arith.constant 0 : index
    %61 = vector.load %arg10[%c0_26, %c0_27] : memref<1x16xf32, #tpu.memory_space<vmem>>, vector<1x16xf32>
    %62 = vector.broadcast %61 : vector<1x16xf32> to vector<8x16xf32>
    %63 = arith.addf %60, %62 : vector<8x16xf32>
    %64 = math.tanh %63 : vector<8x16xf32>
    %65 = vector.extract_strided_slice %64 {offsets = [0, 0], sizes = [8, 8], strides = [1, 1]} : vector<8x16xf32> to vector<8x8xf32>
    %66 = arith.addf %30, %65 : vector<8x8xf32>
    %c0_28 = arith.constant 0 : index
    %c0_29 = arith.constant 0 : index
    %c0_30 = arith.constant 0 : index
    %67 = vector.load %arg11[%c0_28, %c0_29, %c0_30] : memref<1x8x16xf32, #tpu.memory_space<vmem>>, vector<1x8x8xf32>
    %68 = vector.shape_cast %67 : vector<1x8x8xf32> to vector<8x8xf32>
    %69 = vector.shape_cast %66 : vector<8x8xf32> to vector<1x8x8xf32>
    tpu.vector_store %arg11[%c0_28, %c0_29, %c0_30], %69 {strides = array<i32>} : memref<1x8x16xf32, #tpu.memory_space<vmem>>, vector<1x8x8xf32>,
    %70 = vector.extract_strided_slice %64 {offsets = [0, 8], sizes = [8, 8], strides = [1, 1]} : vector<8x16xf32> to vector<8x8xf32>
    %71 = arith.subf %27, %70 : vector<8x8xf32>
    %c0_31 = arith.constant 0 : index
    %c0_32 = arith.constant 0 : index
    %c8 = arith.constant 8 : index
    %72 = vector.load %arg11[%c0_31, %c0_32, %c8] : memref<1x8x16xf32, #tpu.memory_space<vmem>>, vector<1x8x8xf32>
    %73 = vector.shape_cast %72 : vector<1x8x8xf32> to vector<8x8xf32>
    %74 = vector.shape_cast %71 : vector<8x8xf32> to vector<1x8x8xf32>
    tpu.vector_store %arg11[%c0_31, %c0_32, %c8], %74 {strides = array<i32>} : memref<1x8x16xf32, #tpu.memory_space<vmem>>, vector<1x8x8xf32>,
    return
  }
  func.func @transform_0(%arg0: i32) -> (i32, i32, i32) {
    %c0_i32 = arith.constant 0 : i32
    %c0_i32_0 = arith.constant 0 : i32
    %c0_i32_1 = arith.constant 0 : i32
    return %arg0, %c0_i32, %c0_i32_0 : i32, i32, i32
  }
  func.func @transform_1(%arg0: i32) -> (i32, i32, i32) {
    %c0_i32 = arith.constant 0 : i32
    %c0_i32_0 = arith.constant 0 : i32
    %c0_i32_1 = arith.constant 0 : i32
    return %arg0, %c0_i32, %c0_i32_0 : i32, i32, i32
  }
  func.func @transform_2(%arg0: i32) -> (i32, i32) {
    %c0_i32 = arith.constant 0 : i32
    %c0_i32_0 = arith.constant 0 : i32
    %c0_i32_1 = arith.constant 0 : i32
    return %c0_i32, %c0_i32_0 : i32, i32
  }
  func.func @transform_3(%arg0: i32) -> (i32, i32) {
    %c0_i32 = arith.constant 0 : i32
    %c0_i32_0 = arith.constant 0 : i32
    %c0_i32_1 = arith.constant 0 : i32
    return %c0_i32, %c0_i32_0 : i32, i32
  }
  func.func @transform_4(%arg0: i32) -> (i32, i32) {
    %c0_i32 = arith.constant 0 : i32
    %c0_i32_0 = arith.constant 0 : i32
    %c0_i32_1 = arith.constant 0 : i32
    return %c0_i32, %c0_i32_0 : i32, i32
  }
  func.func @transform_5(%arg0: i32) -> (i32, i32) {
    %c0_i32 = arith.constant 0 : i32
    %c0_i32_0 = arith.constant 0 : i32
    %c0_i32_1 = arith.constant 0 : i32
    return %c0_i32, %c0_i32_0 : i32, i32
  }
  func.func @transform_6(%arg0: i32) -> (i32, i32) {
    %c0_i32 = arith.constant 0 : i32
    %c0_i32_0 = arith.constant 0 : i32
    %c0_i32_1 = arith.constant 0 : i32
    return %c0_i32, %c0_i32_0 : i32, i32
  }
  func.func @transform_7(%arg0: i32) -> (i32, i32) {
    %c0_i32 = arith.constant 0 : i32
    %c0_i32_0 = arith.constant 0 : i32
    %c0_i32_1 = arith.constant 0 : i32
    return %c0_i32, %c0_i32_0 : i32, i32
  }
  func.func @transform_8(%arg0: i32) -> (i32, i32) {
    %c0_i32 = arith.constant 0 : i32
    %c0_i32_0 = arith.constant 0 : i32
    %c0_i32_1 = arith.constant 0 : i32
    return %c0_i32, %c0_i32_0 : i32, i32
  }
  func.func @transform_9(%arg0: i32) -> (i32, i32) {
    %c0_i32 = arith.constant 0 : i32
    %c0_i32_0 = arith.constant 0 : i32
    %c0_i32_1 = arith.constant 0 : i32
    return %c0_i32, %c0_i32_0 : i32, i32
  }
  func.func @transform_10(%arg0: i32) -> (i32, i32, i32) {
    %c0_i32 = arith.constant 0 : i32
    %c0_i32_0 = arith.constant 0 : i32
    %c0_i32_1 = arith.constant 0 : i32
    return %arg0, %c0_i32, %c0_i32_0 : i32, i32, i32
  }
}

</mosaic_0001>

<bundles_post_ra>
// kernel: levelscinet_pallas.1
= control target key start
LH: loop header
LB: loop body
LE: loop exit
PB: predicated region body
PF: predicated region fallthrough
CT: control target
= control target key end

     0   :  { %s1308_s13 = smov 0   ;;  %s1532_s0 = inlined_call_operand.vmem [shape: f32[2,10,80], index: 0, kind: input, shape index: {}]   ;;  %s1533_s1 = inlined_call_operand.vmem [shape: f32[2,8,16], index: 1, kind: input, shape index: {}]   ;;  %s1534_s2 = inlined_call_operand.vmem [shape: f32[80,32], index: 2, kind: input, shape index: {}]   ;;  %s1535_s3 = inlined_call_operand.vmem [shape: f32[1,32], index: 3, kind: input, shape index: {}]   ;;  %s1536_s4 = inlined_call_operand.vmem [shape: f32[96,16], index: 4, kind: input, shape index: {}]   ;;  %s1537_s5 = inlined_call_operand.vmem [shape: f32[1,16], index: 5, kind: input, shape index: {}]   ;;  %s1538_s6 = inlined_call_operand.vmem [shape: f32[80,32], index: 6, kind: input, shape index: {}]   ;;  %s1539_s7 = inlined_call_operand.vmem [shape: f32[1,32], index: 7, kind: input, shape index: {}]   ;;  %s1540_s8 = inlined_call_operand.vmem [shape: f32[96,16], index: 8, kind: input, shape index: {}]   ;;  %s1541_s9 = inlined_call_operand.vmem [shape: f32[1,16], index: 9, kind: input, shape index: {}]   ;;  %s1542_s10 = inlined_call_operand.vmem [shape: f32[2,8,16], index: 10, kind: output, shape index: {}]  }
   0x1 LB: > { %s965_s14 = sadd.s32 4294967295, %s1242_s13   ;;  %p969_p0 = scmp.ge.s32.totalorder %s1242_s13, 1  ;;  %s1242_s13 = sphi %s1308_s13, %s20_s13  }
   0x2   : > { %p321_p1 = scmp.lt.s32.totalorder %s1242_s13, 3 }
   0x4   : > { %p322_p2 = pnand %p969_p0, %p321_p1 }
   0x5   : > { %v377_v0 = vld [vmem:[%s1534_s2] sm:$0xff] (!%p322_p2)  ;;  %v378_v1 = vld [vmem:[%s1534_s2 + $0x8] sm:$0xff] (!%p322_p2)  ;;  %v379_v2 = vld [vmem:[%s1534_s2 + $0x10] sm:$0xff] (!%p322_p2)  ;;  %p362_p3 = scmp.lt.s32.totalorder (!%p322_p2), %s965_s14, 1  ;;  %vm394_vm0 = vcmask (!%p322_p2), 654336   ;;  %v1244_v20 = vmov (!%p322_p2), 0.0|0.0  }
   0x6   : > { %325 = sbr.rel (%p322_p2) target bundleno = 1546 (0x60a), region = 60  ;;  %v1137_v3 = vpack.c.bf16 (!%p322_p2), %v378_v1, %v377_v0  ;;  %v380_v4 = vld [vmem:[%s1534_s2 + $0x18] sm:$0xff] (!%p322_p2)  ;;  %v381_v6 = vld [vmem:[%s1534_s2 + $0x20] sm:$0xff] (!%p322_p2)  ;;  %v382_v7 = vld [vmem:[%s1534_s2 + $0x28] sm:$0xff] (!%p322_p2)  ;;  %1157 = vmatprep.subr.bf16.mxu1 (!%p322_p2), %v1244_v20  ;;  %vm1245_vm1 = vmmov (!%p322_p2), 0   ;;  %v1246_v40 = vmov (!%p322_p2), 0.0  }
   0x7   : > { %v1141_v5 = vpack.c.bf16 (!%p322_p2), %v380_v4, %v379_v2  ;;  %v1145_v8 = vpack.c.bf16 (!%p322_p2), %v382_v7, %v381_v6  ;;  %v383_v9 = vld [vmem:[%s1534_s2 + $0x30] sm:$0xff] (!%p322_p2)  ;;  %v384_v10 = vld [vmem:[%s1534_s2 + $0x38] sm:$0xff] (!%p322_p2)  ;;  %v385_v13 = vld [vmem:[%s1534_s2 + $0x40] sm:$0xff] (!%p322_p2)  ;;  %1084 = vmatprep.mubr.msk.f32.mxu1 (!%p322_p2), %vm1245_vm1, %v1246_v40  ;;  %vm484_vm4 = vcmask (!%p322_p2), 1046528   ;;  %s1247_s29 = smov (!%p322_p2), 32   ;;  %vm491_vm5 = vcmask (!%p322_p2), 1045504  }
   0x8   : > { %1138 = vmatprep.subr.bf16.mxu0 (!%p322_p2), %v1137_v3  ;;  %v1149_v12 = vpack.c.bf16 (!%p322_p2), %v384_v10, %v383_v9  ;;  %v386_v14 = vld [vmem:[%s1534_s2 + $0x48] sm:$0xff] (!%p322_p2)  ;;  %v502_v17 = vld [vmem:[%s1536_s4] sm:$0xff] (!%p322_p2)  ;;  %v504_v19 = vld [vmem:[%s1536_s4 + $0x10] sm:$0xff] (!%p322_p2)  ;;  %vm498_vm6 = vcmask (!%p322_p2), 261120   ;;  %vm500_vm7 = vcmask (!%p322_p2), 523264   ;;  %vm521_vm8 = vcmask (!%p322_p2), 785408  }
   0x9   : > { %1140 = vmatpush3.bf16.msra.mxu0 (!%p322_p2), %v1137_v3  ;;  %v1153_v15 = vpack.c.bf16 (!%p322_p2), %v386_v14, %v385_v13  ;;  %v503_v18 = vld [vmem:[%s1536_s4 + $0x8] sm:$0xff] (!%p322_p2)  ;;  %v505_v22 = vld [vmem:[%s1536_s4 + $0x18] sm:$0xff] (!%p322_p2)  ;;  %v506_v24 = vld [vmem:[%s1536_s4 + $0x20] sm:$0xff] (!%p322_p2)  ;;  %s1249_s15 = smov (!%p322_p2), 8   ;;  %s1250_s16 = smov (!%p322_p2), 120   ;;  %v618_v10 = vlaneseq (!%p322_p2)  ;;  %vm616_vm9 = vcmask (!%p322_p2), 64512  }
   0xa   : > { %1142 = vmatprep.subr.bf16.mxu0 (!%p322_p2), %v1141_v5  ;;  %v1158_v21 = vpack.c.bf16 (!%p322_p2), %v503_v18, %v502_v17  ;;  %v1161_v23 = vpack.c.bf16 (!%p322_p2), %v505_v22, %v504_v19  ;;  %v507_v25 = vld [vmem:[%s1536_s4 + $0x28] sm:$0xff] (!%p322_p2)  ;;  %v508_v27 = vld [vmem:[%s1536_s4 + $0x30] sm:$0xff] (!%p322_p2)  ;;  %v509_v28 = vld [vmem:[%s1536_s4 + $0x38] sm:$0xff] (!%p322_p2)  ;;  %vm629_vm10 = vcmask (!%p322_p2), 1042432   ;;  %s1251_s26 = smov (!%p322_p2), 16   ;;  %vm652_vm11 = vcmask (!%p322_p2), 1044480  }
   0xb   : > { %v1164_v26 = vpack.c.bf16 (!%p322_p2), %v507_v25, %v506_v24  ;;  %v1167_v29 = vpack.c.bf16 (!%p322_p2), %v509_v28, %v508_v27  ;;  %v510_v30 = vld [vmem:[%s1536_s4 + $0x40] sm:$0xff] (!%p322_p2)  ;;  %v511_v31 = vld [vmem:[%s1536_s4 + $0x48] sm:$0xff] (!%p322_p2)  ;;  %v512_v33 = vld [vmem:[%s1536_s4 + $0x50] sm:$0xff] (!%p322_p2)  ;;  %vm662_vm12 = vcmask (!%p322_p2), 1043456   ;;  %vm672_vm13 = vcmask (!%p322_p2), 130048  }
   0xc   : > { %1159 = vmatpush3.bf16.msra.mxu1 (!%p322_p2), %v1158_v21  ;;  %v1170_v32 = vpack.c.bf16 (!%p322_p2), %v511_v31, %v510_v30  ;;  %v513_v34 = vld [vmem:[%s1536_s4 + $0x58] sm:$0xff] (!%p322_p2)  ;;  %v974_v36 = vld [vmem:[%s1535_s3] ss:$0 sm:$0xff] (!%p322_p2)  ;;  %v684_v6 = vld [vmem:[%s1538_s6 + $0x10] sm:$0xff] (!%p322_p2)  ;;  %vm677_vm14 = vcmask (!%p322_p2), 392192  }
   0xd   : > { %s1544_s14 = smov (!%p362_p3, %s965_s14), 1  ;;  %1144 = vmatpush3.bf16.msra.mxu0 %v1141_v5  ;;  %1160 = vmatprep.subr.bf16.mxu1 %v1244_v20  ;;  %v1173_v35 = vpack.c.bf16 %v513_v34, %v512_v33  ;;  %v977_v56 = vld [vmem:[%s1537_s5] ss:$0 sm:$0xff]  ;;  %v683_v5 = vld [vmem:[%s1538_s6 + $0x8] sm:$0xff]  ;;  %v688_v17 = vld [vmem:[%s1538_s6 + $0x30] sm:$0xff] }
   0xe   : > { %s986_s27 = sshll.u32 %s1544_s14, 4  ;;  %1146 = vmatprep.subr.bf16.mxu0 %v1145_v8  ;;  %s972_s17 = sshll.u32 %s1544_s14, 3  ;;  %v682_v4 = vld [vmem:[%s1538_s6] sm:$0xff]  ;;  %v687_v13 = vld [vmem:[%s1538_s6 + $0x28] sm:$0xff]  ;;  %v689_v18 = vld [vmem:[%s1538_s6 + $0x38] sm:$0xff] }
   0xf   : > { %s366_s30 = scalar_lea.vmem %s1532_s0, %s986_s27  ;;  %s370_s20 = scalar_lea.vmem %s1533_s1, %s972_s17  ;;  %v1175_v7 = vpack.c.bf16 %v683_v5, %v682_v4  ;;  %v1187_v22 = vpack.c.bf16 %v689_v18, %v688_v17  ;;  %v690_v27 = vld [vmem:[%s1538_s6 + $0x40] sm:$0xff]  ;;  %v691_v28 = vld [vmem:[%s1538_s6 + $0x48] sm:$0xff] }
  0x10   : > { %v375_v11 = vld [vmem:[%s366_s30] sm:$0xff]  ;;  %v376_v16 = vld [vmem:[%s366_s30 + $0x8] sm:$0x3]  ;;  %1162 = vmatpush3.bf16.msra.mxu1 %v1161_v23  ;;  %s1248_s30 = smov 64   ;;  %v1191_v31 = vpack.c.bf16 %v691_v28, %v690_v27  ;;  %s1252_s27 = smov 48  }
  0x11   : > { %1057 = vmatprep.mubr.msk.f32.mxu0 %vm394_vm0, %v375_v11  ;;  %1148 = vmatpush3.bf16.msra.mxu0 %v1145_v8  ;;  %v596_v63 = vld [vmem:[%s370_s20] sm:$0xff]  ;;  %v685_v8 = vld [vmem:[%s1538_s6 + $0x18] sm:$0xff]  ;;  %v619_v11 = vshrl.u32 %v618_v10, 7  ;;  %v807_v5 = vld [vmem:[%s1540_s8 + $0x28] sm:$0xff] }
  0x12   : > { %1150 = vmatprep.subr.bf16.mxu0 %v1149_v12  ;;  %1163 = vmatprep.subr.bf16.mxu1 %v1244_v20  ;;  %v1179_v9 = vpack.c.bf16 %v685_v8, %v684_v6  ;;  %v806_v4 = vld [vmem:[%s1540_s8 + $0x20] sm:$0xff]  ;;  %v809_v8 = vld [vmem:[%s1540_s8 + $0x38] sm:$0xff] }
  0x13   : > { %v1202_v6 = vpack.c.bf16 %v807_v5, %v806_v4  ;;  %v810_v10 = vld [vmem:[%s1540_s8 + $0x40] sm:$0xff] }
  0x14   : > { %1165 = vmatpush3.bf16.msra.mxu1 %v1164_v26 }
  0x15   : > { %1152 = vmatpush3.bf16.msra.mxu0 %v1149_v12  ;;  %1166 = vmatprep.subr.bf16.mxu1 %v1244_v20  ;;  %v686_v12 = vld [vmem:[%s1538_s6 + $0x20] sm:$0xff] }
  0x16   : > { %1154 = vmatprep.subr.bf16.mxu0 %v1153_v15  ;;  %v1183_v14 = vpack.c.bf16 %v687_v13, %v686_v12  ;;  %v812_v13 = vld [vmem:[%s1540_s8 + $0x50] sm:$0xff] }
  0x18   : > { %1168 = vmatpush3.bf16.msra.mxu1 %v1167_v29 }
  0x19   : > { %1156 = vmatpush3.bf16.msra.mxu0 %v1153_v15  ;;  %1169 = vmatprep.subr.bf16.mxu1 %v1244_v20  ;;  %v620_v15 = vsub.s32 0, %v619_v11 }
  0x1a   : > { %1176 = vmatprep.subr.bf16.mxu0 %v1175_v7 }
  0x1c   : > { %1058 = vmatmul.mubr.msk.f32.vlgmr.msra.gmra.mrb[0].mxu0 %vm394_vm0, %v376_v16  ;;  %1171 = vmatpush3.bf16.msra.mxu1 %v1170_v32  ;;  %v624_v16 = vsub.s32 7, %v619_v11  ;;  %v811_v11 = vld [vmem:[%s1540_s8 + $0x48] sm:$0xff] }
  0x1d   : > { %1172 = vmatprep.subr.bf16.mxu1 %v1244_v20  ;;  %1178 = vmatpush3.bf16.msra.mxu0 %v1175_v7  ;;  %v808_v7 = vld [vmem:[%s1540_s8 + $0x30] sm:$0xff]  ;;  %v1208_v12 = vpack.c.bf16 %v811_v11, %v810_v10 }
  0x1e   : > { %1180 = vmatprep.subr.bf16.mxu0 %v1179_v9 }
  0x20   : > { %1174 = vmatpush3.bf16.msra.mxu1 %v1173_v35 }
  0x21   : > { %1195 = vmatprep.subr.bf16.mxu1 %v1244_v20  ;;  %1182 = vmatpush3.bf16.msra.mxu0 %v1179_v9  ;;  %v1205_v9 = vpack.c.bf16 %v809_v8, %v808_v7 }
  0x22   : > { %1184 = vmatprep.subr.bf16.mxu0 %v1183_v14 }
  0x25   : > { %1186 = vmatpush3.bf16.msra.mxu0 %v1183_v14  ;;  %v813_v14 = vld [vmem:[%s1540_s8 + $0x58] sm:$0xff] }
  0x26   : > { %1188 = vmatprep.subr.bf16.mxu0 %v1187_v22 }
  0x29   : > { %1190 = vmatpush3.bf16.msra.mxu0 %v1187_v22 }
  0x2a   : > { %1192 = vmatprep.subr.bf16.mxu0 %v1191_v31 }
  0x2d   : > { %1194 = vmatpush3.bf16.msra.mxu0 %v1191_v31 }
  0xef   : > { %v1059_v37 = vpop.f32.mrb[0].mxu0 }
  0xf0   : > { %v473_v38 = vadd.f32 %v1059_v37, %v974_v36  ;;  %v467_v39 = vpop.f32.mrb[1].mxu0 }
  0xf1   : > { %v468_v41 = vadd.f32 %v974_v36, %v467_v39 }
  0xf2   : > { %vm477_vm2 = vcmp.gt.f32.partialorder %v473_v38, 0.0  ;;  %v479_v42 = vmul.f32 0.01, %v473_v38 }
  0xf3   : > { %vm476_vm3 = vcmp.gt.f32.partialorder %v468_v41, 0.0  ;;  %v478_v43 = vmul.f32 0.01, %v468_v41 }
  0xf4   : > { %v481_v44 = vsel %vm477_vm2, %v473_v38, %v479_v42 }
  0xf5   : > { %v480_v45 = vsel %vm476_vm3, %v468_v41, %v478_v43  ;;  %v486_v46 = vrot.slane %v481_v44, 1  ;;  %v493_v48 = vrot.slane %v481_v44, 2 }
  0xf6   : > { %v485_v47 = vrot.slane %v480_v45, 1  ;;  %v492_v50 = vrot.slane %v480_v45, 2 }
  0xf8   : > { %v487_v49 = vsel %vm484_vm4, %v485_v47, %v486_v46  ;;  %v494_v51 = vsel %vm491_vm5, %v492_v50, %v493_v48 }
  0xf9   : > { %488 = vrot.lane.b32.xlu0 %v487_v49, %s1247_s29 }
  0xfd   : > { %495 = vrot.lane.b32.xlu0 %v494_v51, %s1248_s30 }
 0x16b   : > { %v489_v52 = vpop.permute.xlu0 %488 }
 0x16c   : > { %v499_v53 = vsel %vm498_vm6, %v480_v45, %v489_v52 }
 0x16f   : > { %v496_v54 = vpop.permute.xlu0 %495 }
 0x170   : > { %v501_v55 = vsel %vm500_vm7, %v499_v53, %v496_v54 }
 0x171   : > { %1085 = vmatmul.mubr.msk.f32.vlgmr.msra.gmra.mrb[0].mxu1 %vm521_vm8, %v501_v55 }
 0x172   : > { %1134 = vmatprep.mubr.msk.f32.mxu1 %vm1245_vm1, %v1246_v40  ;;  %vm898_vm1 = vcmask 130112  }
 0x244   : > { %v591_v57 = vpop.f32.mrb[0].mxu1 }
 0x245   : > { %v592_v58 = vadd.f32 %v977_v56, %v591_v57  ;;  %v1086_v59 = vpop.f32.mrb[1].mxu1 }
 0x247   : > { %1230 = vtanh.f32 %v592_v58 }
 0x251   : > { %v1231_v60 = vpop.eup %1230 }
 0x252   : > { %v597_v61 = vmul.f32 1.442695, %v1231_v60  ;;  %v802_v60 = vld [vmem:[%s1540_s8] sm:$0xff] }
 0x254   : > { %1232 = vpow2.f32 %v597_v61  ;;  %v803_v61 = vld [vmem:[%s1540_s8 + $0x8] sm:$0xff] }
 0x25e   : > { %v1233_v62 = vpop.eup %1232 }
 0x25f   : > { %600 = vrot.lane.b32.xlu1 %v1233_v62, %s1249_s15 }
 0x263   : > { %604 = vrot.lane.b32.xlu1 %v1233_v62, %s1250_s16  ;;  %v804_v62 = vld [vmem:[%s1540_s8 + $0x10] sm:$0xff] }
 0x2d1   : > { %v601_v0 = vpop.permute.xlu1 %600 }
 0x2d2   : > { %v1418_v1 = vmul.f32 %v601_v0, %v596_v63  ;;  %v805_v0 = vld [vmem:[%s1540_s8 + $0x18] sm:$0xff] }
 0x2d4   : > { %609 = vrot.lane.b32.xlu0 %v1418_v1, %s1250_s16 }
 0x2d5   : > { %v605_v2 = vpop.permute.xlu1 %604 }
 0x2d6   : > { %v1421_v3 = vmul.f32 %v605_v2, %v596_v63  ;;  %v1196_v63 = vpack.c.bf16 %v803_v61, %v802_v60  ;;  %v1199_v2 = vpack.c.bf16 %v805_v0, %v804_v62 }
 0x2d8   : > { %613 = vrot.lane.b32.xlu1 %v1421_v3, %s1249_s15  ;;  %1197 = vmatpush3.bf16.msra.mxu1 %v1196_v63 }
 0x2d9   : > { %1198 = vmatprep.subr.bf16.mxu1 %v1244_v20 }
 0x2dc   : > { %1200 = vmatpush3.bf16.msra.mxu1 %v1199_v2 }
 0x2dd   : > { %1201 = vmatprep.subr.bf16.mxu1 %v1244_v20 }
 0x2e0   : > { %1203 = vmatpush3.bf16.msra.mxu1 %v1202_v6 }
 0x2e1   : > { %1204 = vmatprep.subr.bf16.mxu1 %v1244_v20 }
 0x2e4   : > { %1206 = vmatpush3.bf16.msra.mxu1 %v1205_v9 }
 0x2e5   : > { %1207 = vmatprep.subr.bf16.mxu1 %v1244_v20 }
 0x2e8   : > { %1209 = vmatpush3.bf16.msra.mxu1 %v1208_v12 }
 0x2e9   : > { %1210 = vmatprep.subr.bf16.mxu1 %v1244_v20 }
 0x346   : > { %v610_v19 = vpop.permute.xlu0 %609 }
 0x34a   : > { %v614_v21 = vpop.permute.xlu1 %613 }
 0x34b   : > { %v617_v23 = vsel %vm616_vm9, %v610_v19, %v614_v21 }
 0x34c   : > { %v621_v24 = vrot.slane %v617_v23, %v620_v15  ;;  %v625_v25 = vrot.slane %v617_v23, %v624_v16  ;;  %v627_v26 = vrot.slane %v617_v23, 5  ;;  %v1211_v15 = vpack.c.bf16 %v813_v14, %v812_v13  ;;  %v979_v16 = vld [vmem:[%s1539_s7] ss:$0 sm:$0xff] }
 0x34e   : > { %v630_v29 = vsel %vm629_vm10, %v621_v24, %v627_v26  ;;  %v631_v30 = vsel %vm629_vm10, %v627_v26, %v625_v25  ;;  %1212 = vmatpush3.bf16.msra.mxu1 %v1211_v15 }
 0x34f   : > { %v635_v32 = vrot.slane %v631_v30, 1  ;;  %v634_v33 = vrot.slane %v630_v29, 1  ;;  %v644_v35 = vrot.slane %v631_v30, 2  ;;  %v643_v36 = vrot.slane %v630_v29, 2 }
 0x350   : > { %v654_v38 = vrot.slane %v631_v30, 3  ;;  %v653_v39 = vrot.slane %v630_v29, 3  ;;  %v664_v41 = vrot.slane %v631_v30, 4  ;;  %v663_v42 = vrot.slane %v630_v29, 4 }
 0x351   : > { %639 = vrot.lane.b32.xlu1 %v635_v32, %s1251_s26  ;;  %v636_v34 = vsel %vm484_vm4, %v634_v33, %v635_v32  ;;  %v645_v37 = vsel %vm491_vm5, %v643_v36, %v644_v35 }
 0x352   : > { %637 = vrot.lane.b32.xlu0 %v636_v34, %s1251_s26  ;;  %v655_v40 = vsel %vm652_vm11, %v653_v39, %v654_v38  ;;  %v665_v43 = vsel %vm662_vm12, %v663_v42, %v664_v41  ;;  %s374_s26 = scalar_lea.vmem %s1542_s10, %s972_s17 }
 0x355   : > { %648 = vrot.lane.b32.xlu1 %v644_v35, %s1247_s29  ;;  %v982_v35 = vld [vmem:[%s1541_s9] ss:$0 sm:$0xff] }
 0x356   : > { %646 = vrot.lane.b32.xlu0 %v645_v37, %s1247_s29 }
 0x359   : > { %658 = vrot.lane.b32.xlu1 %v654_v38, %s1252_s27 }
 0x35a   : > { %656 = vrot.lane.b32.xlu0 %v655_v40, %s1252_s27 }
 0x35d   : > { %668 = vrot.lane.b32.xlu1 %v664_v41, %s1248_s30 }
 0x35e   : > { %666 = vrot.lane.b32.xlu0 %v665_v43, %s1248_s30 }
 0x3c3   : > { %v640_v44 = vpop.permute.xlu1 %639 }
 0x3c4   : > { %v638_v45 = vpop.permute.xlu0 %637  ;;  %v674_v51 = vsel %vm672_vm13, %v631_v30, %v640_v44 }
 0x3c5   : > { %v673_v50 = vsel %vm672_vm13, %v630_v29, %v638_v45 }
 0x3c7   : > { %v649_v46 = vpop.permute.xlu1 %648 }
 0x3c8   : > { %v647_v47 = vpop.permute.xlu0 %646  ;;  %v676_v54 = vsel %vm498_vm6, %v674_v51, %v649_v46 }
 0x3c9   : > { %v675_v52 = vsel %vm498_vm6, %v673_v50, %v647_v47 }
 0x3cb   : > { %v659_v48 = vpop.permute.xlu1 %658 }
 0x3cc   : > { %v657_v49 = vpop.permute.xlu0 %656  ;;  %v679_v57 = vsel %vm677_vm14, %v676_v54, %v659_v48 }
 0x3cd   : > { %v678_v55 = vsel %vm677_vm14, %v675_v52, %v657_v49 }
 0x3cf   : > { %v669_v53 = vpop.permute.xlu1 %668 }
 0x3d0   : > { %v667_v56 = vpop.permute.xlu0 %666  ;;  %v681_v59 = vsel %vm500_vm7, %v679_v57, %v669_v53 }
 0x3d1   : > { %v680_v58 = vsel %vm500_vm7, %v678_v55, %v667_v56 }
 0x3d2   : > { %1107 = vmatprep.mubr.msk.f32.mxu0 %vm394_vm0, %v680_v58 }
 0x3d3   : > { %1108 = vmatmul.mubr.msk.f32.vlgmr.msra.gmra.mrb[2].mxu0 %vm394_vm0, %v681_v59 }
 0x4a6   : > { %v1109_v17 = vpop.f32.mrb[2].mxu0 }
 0x4a7   : > { %v777_v18 = vadd.f32 %v1109_v17, %v979_v16  ;;  %v771_v19 = vpop.f32.mrb[3].mxu0 }
 0x4a8   : > { %v772_v21 = vadd.f32 %v979_v16, %v771_v19 }
 0x4a9   : > { %vm781_vm15 = vcmp.gt.f32.partialorder %v777_v18, 0.0  ;;  %v783_v22 = vmul.f32 0.01, %v777_v18 }
 0x4aa   : > { %vm780_vm0 = vcmp.gt.f32.partialorder %v772_v21, 0.0  ;;  %v782_v23 = vmul.f32 0.01, %v772_v21 }
 0x4ab   : > { %v785_v24 = vsel %vm781_vm15, %v777_v18, %v783_v22 }
 0x4ac   : > { %v789_v25 = vrot.slane %v785_v24, 1  ;;  %v795_v26 = vrot.slane %v785_v24, 2  ;;  %v784_v27 = vsel %vm780_vm0, %v772_v21, %v782_v23 }
 0x4ad   : > { %v794_v28 = vrot.slane %v784_v27, 2  ;;  %v788_v29 = vrot.slane %v784_v27, 1 }
 0x4af   : > { %v796_v20 = vsel %vm491_vm5, %v794_v28, %v795_v26  ;;  %v790_v30 = vsel %vm484_vm4, %v788_v29, %v789_v25 }
 0x4b0   : > { %797 = vrot.lane.b32.xlu1 %v796_v20, %s1248_s30  ;;  %791 = vrot.lane.b32.xlu0 %v790_v30, %s1247_s29 }
 0x522   : > { %v798_v31 = vpop.permute.xlu1 %797  ;;  %v792_v32 = vpop.permute.xlu0 %791 }
 0x523   : > { %v800_v33 = vsel %vm498_vm6, %v784_v27, %v792_v32 }
 0x524   : > { %v801_v34 = vsel %vm500_vm7, %v800_v33, %v798_v31 }
 0x525   : > { %1135 = vmatmul.mubr.msk.f32.vlgmr.msra.gmra.mrb[2].mxu1 %vm521_vm8, %v801_v34 }
 0x5f8   : > { %v890_v36 = vpop.f32.mrb[2].mxu1 }
 0x5f9   : > { %v891_v37 = vadd.f32 %v982_v35, %v890_v36  ;;  %v1136_v38 = vpop.f32.mrb[3].mxu1 }
 0x5fb   : > { %1234 = vtanh.f32 %v891_v37 }
 0x605   : > { %v1235_v39 = vpop.eup %1234 }
 0x606   : > { %v895_v40 = vadd.f32 %v1235_v39, %v1421_v3  ;;  %v897_v41 = vsub.f32 %v1418_v1, %v1235_v39 }
 0x608   : > { %896 = vst.msk [vmem:[%s374_s26] sm:$0xff] %vm616_vm9, %v895_v40 }
 0x609   : > { %899 = vst.msk [vmem:[%s374_s26] sm:$0xff] %vm898_vm1, %v897_v41 }
 0x60a PF: > { %s20_s13 = sadd.s32 1, %s1242_s13  }
 0x60b   : > { %p17_p4 = scmp.ge.s32.totalorder %s20_s13, 4  }
 0x60d   :  { %19 = sbr.rel (!%p17_p4) target bundleno = 1 (0x1), region = 93 }

</bundles_post_ra>
